<compile_context>
chip_gen: v5e
topology: v5e:2x2
jax: 0.10.0
libtpu: 0.0.40
codegen_flags: <defaults>
</compile_context>

<pallas_src>
import jax
import jax.numpy as jnp
from jax.experimental import pallas as pl
from jax.experimental.pallas import tpu as pltpu


# ---------------------------------------------------------------------------
# Kernel 1: transposed-conv as a matmul, fused with BN statistics.
# Grid axis is a sequential ("arbitrary") sweep over row tiles; the two
# (1, 4*Cout) stat outputs are resident accumulators across it.
# ---------------------------------------------------------------------------
def convt_stats_kernel(x_ref, w_ref, y_ref, sum_ref, sq_ref):
    @pl.when(pl.program_id(0) == 0)
    def _():
        sum_ref[...] = jnp.zeros_like(sum_ref)
        sq_ref[...] = jnp.zeros_like(sq_ref)

    acc = jnp.dot(x_ref[...], w_ref[...], preferred_element_type=jnp.float32)
    y_ref[...] = acc.astype(y_ref.dtype)
    sum_ref[...] += jnp.sum(acc, axis=0, keepdims=True)
    sq_ref[...] += jnp.sum(acc * acc, axis=0, keepdims=True)


# ---------------------------------------------------------------------------
# Kernel 2: pre-folded BN affine (y*scale + shift) + LeakyReLU, on the
# un-shuffled (rows, 4*Cout) layout.
# ---------------------------------------------------------------------------
def bn_lrelu_kernel(y_ref, scale_ref, shift_ref, o_ref):
    y = y_ref[...].astype(jnp.float32)
    yn = y * scale_ref[...] + shift_ref[...]
    o_ref[...] = jnp.where(yn >= 0.0, yn, 0.01 * yn).astype(o_ref.dtype)


# ---------------------------------------------------------------------------
# Wrapper
# ---------------------------------------------------------------------------
def upsample_block(x1, x2, params, *, block_rows=512):
    """x1: (N, Cin, H, W) NCHW, x2: (N, C2, 2H, 2W) NCHW. Returns NCHW."""
    w, b, gamma, beta = params["w"], params["b"], params["gamma"], params["beta"]
    N, Cin, H, W = x1.shape
    Cout = w.shape[1]
    Ho, Wo = 2 * H, 2 * W
    C4 = 4 * Cout

    # ---- flatten x1 to (rows, Cin) with channels on lanes -------------------
    x_flat = jnp.transpose(x1, (0, 2, 3, 1)).reshape(N * H * W, Cin)
    M = N * H * W

    # Row tile: as large as possible; pad rows to a tile multiple. Padded rows
    # are all-zero -> they contribute nothing to the bias-free statistics.
    tm = min(block_rows, M)
    if tm < M:
        tm = max(8, (tm // 8) * 8)
    M_pad = pl.cdiv(M, tm) * tm
    if M_pad != M:
        x_flat = jnp.pad(x_flat, ((0, M_pad - M), (0, 0)))

    # (Cin, Cout, 2, 2) -> (Cin, 2, 2, Cout) -> (Cin, 4*Cout); columns = (di, dj, co)
    w4 = jnp.transpose(w, (0, 2, 3, 1)).reshape(Cin, C4)

    cparams_seq = pltpu.CompilerParams(
        dimension_semantics=("arbitrary",),          # stat accumulation is serial
        vmem_limit_bytes=48 * 1024 * 1024,           # fits v7x's 64 MiB physical VMEM
    )
    cparams_par = pltpu.CompilerParams(
        dimension_semantics=("parallel",),
        vmem_limit_bytes=48 * 1024 * 1024,
    )

    # ---- pass 1: matmul + fused BN stats ------------------------------------
    y_flat, sums, sqs = pl.pallas_call(
        convt_stats_kernel,
        out_shape=(
            jax.ShapeDtypeStruct((M_pad, C4), x1.dtype),
            jax.ShapeDtypeStruct((1, C4), jnp.float32),
            jax.ShapeDtypeStruct((1, C4), jnp.float32),
        ),
        grid_spec=pltpu.PrefetchScalarGridSpec(
            num_scalar_prefetch=0,
            grid=(M_pad // tm,),
            in_specs=[
                pl.BlockSpec((tm, Cin), lambda i: (i, 0)),
                pl.BlockSpec((Cin, C4), lambda i: (0, 0)),
            ],
            out_specs=(
                pl.BlockSpec((tm, C4), lambda i: (i, 0)),
                pl.BlockSpec((1, C4), lambda i: (0, 0)),
                pl.BlockSpec((1, C4), lambda i: (0, 0)),
            ),
        ),
        compiler_params=cparams_seq,
    )(x_flat, w4)

    # ---- tiny scalar glue: fold bias + BN affine into (scale, shift) --------
    # BN(conv + b): the per-channel bias shifts the mean and cancels exactly,
    # so it never needs to be added to the big tensor.
    count = jnp.float32(M * 4)                     # N * (2H) * (2W) elements / channel
    s = sums.reshape(4, Cout).sum(axis=0)          # per-Cout sum  (bias-free)
    q = sqs.reshape(4, Cout).sum(axis=0)           # per-Cout sumsq
    mean0 = s / count
    var = q / count - mean0 * mean0                # biased var (PyTorch training BN)
    rstd = jax.lax.rsqrt(var + 1e-5)
    scale = gamma.astype(jnp.float32) * rstd
    shift = beta.astype(jnp.float32) - mean0 * scale
    scale4 = jnp.tile(scale, 4).reshape(1, C4)     # broadcast per-Cout over (di, dj)
    shift4 = jnp.tile(shift, 4).reshape(1, C4)

    # ---- pass 2: normalize + LeakyReLU on the un-shuffled layout -------------
    act_flat = pl.pallas_call(
        bn_lrelu_kernel,
        out_shape=jax.ShapeDtypeStruct((M_pad, C4), x1.dtype),
        grid_spec=pltpu.PrefetchScalarGridSpec(
            num_scalar_prefetch=0,
            grid=(M_pad // tm,),
            in_specs=[
                pl.BlockSpec((tm, C4), lambda i: (i, 0)),
                pl.BlockSpec((1, C4), lambda i: (0, 0)),
                pl.BlockSpec((1, C4), lambda i: (0, 0)),
            ],
            out_specs=pl.BlockSpec((tm, C4), lambda i: (i, 0)),
        ),
        compiler_params=cparams_par,
    )(y_flat, scale4, shift4)

    # ---- single pixel-shuffle, fused with the NCHW transform ----------------
    act = act_flat[:M].reshape(N, H, W, 2, 2, Cout)          # (n, h, w, di, dj, co)
    act_nchw = jnp.transpose(act, (0, 5, 1, 3, 2, 4)).reshape(N, Cout, Ho, Wo)

    # concat in NCHW: x2 is never transposed.
    return jnp.concatenate([act_nchw, x2], axis=1)


# ---------------------------------------------------------------------------
# Pure-JAX reference (mirrors PyTorch semantics) for a correctness check.
# ---------------------------------------------------------------------------
def reference(x1, x2, params):
    w, b, gamma, beta = params["w"], params["b"], params["gamma"], params["beta"]
    N, Cin, H, W = x1.shape
    Cout = w.shape[1]
    up = jnp.einsum("nchw,cokl->nohkwl", x1, w).reshape(N, Cout, 2 * H, 2 * W)
    up = up + b[None, :, None, None]
    mean = up.mean(axis=(0, 2, 3), keepdims=True)
    var = up.var(axis=(0, 2, 3), keepdims=True)            # biased
    upn = (up - mean) * jax.lax.rsqrt(var + 1e-5)
    upn = upn * gamma[None, :, None, None] + beta[None, :, None, None]
    act = jnp.where(upn >= 0.0, upn, 0.01 * upn)
    return jnp.concatenate([act, x2], axis=1)


if __name__ == "__main__":
    key = jax.random.PRNGKey(0)
    k1, k2, kw, kb, kg, kbe = jax.random.split(key, 6)

    N, Cin, Cout, H, W = 2, 4, 8, 8, 8
    x1 = jax.random.normal(k1, (N, Cin, H, W), dtype=jnp.float32)
    x2 = jax.random.normal(k2, (N, Cout, 2 * H, 2 * W), dtype=jnp.float32)

    params = {
        "w": 0.1 * jax.random.normal(kw, (Cin, Cout, 2, 2), dtype=jnp.float32),
        "b": 0.1 * jax.random.normal(kb, (Cout,), dtype=jnp.float32),
        "gamma": 1.0 + 0.1 * jax.random.normal(kg, (Cout,), dtype=jnp.float32),
        "beta": 0.1 * jax.random.normal(kbe, (Cout,), dtype=jnp.float32),
    }

    out = jax.block_until_ready(upsample_block(x1, x2, params))
    ref = jax.block_until_ready(reference(x1, x2, params))

    assert out.shape == (N, 2 * Cout, 2 * H, 2 * W), out.shape
    assert jnp.allclose(out, ref, atol=1e-4, rtol=1e-4), float(
        jnp.max(jnp.abs(out - ref))
    )
    print("KERNEL_OK")
</pallas_src>

<mosaic_0001>
module attributes {stable_mosaic.version = 11 : i64} {
  func.func @convt_stats_kernel(%arg0: i32, %arg1: memref<128x4xf32, #tpu.memory_space<vmem>>, %arg2: memref<4x32xf32, #tpu.memory_space<vmem>>, %arg3: memref<128x32xf32, #tpu.memory_space<vmem>>, %arg4: memref<1x32xf32, #tpu.memory_space<vmem>>, %arg5: memref<1x32xf32, #tpu.memory_space<vmem>>) attributes {dimension_semantics = [#tpu.dimension_semantics<arbitrary>], iteration_bounds = array<i64: 1>, scalar_prefetch = 0 : i64, scratch_operands = 0 : i64, tpu.core_type = #tpu.core_type<tc>, window_params = [{transform_indices = @transform_0, window_bounds = array<i64: 128, 4>}, {pipeline_mode = #tpu.pipeline_mode<synchronous>, transform_indices = @transform_1, window_bounds = array<i64: 4, 32>}, {transform_indices = @transform_2, window_bounds = array<i64: 128, 32>}, {pipeline_mode = #tpu.pipeline_mode<synchronous>, transform_indices = @transform_3, window_bounds = array<i64: 1, 32>}, {pipeline_mode = #tpu.pipeline_mode<synchronous>, transform_indices = @transform_4, window_bounds = array<i64: 1, 32>}]} {
    %c0_i32 = arith.constant 0 : i32
    %0 = arith.cmpi eq, %arg0, %c0_i32 : i32
    %1 = arith.extui %0 : i1 to i32
    %c0_i32_0 = arith.constant 0 : i32
    %2 = arith.cmpi ne, %1, %c0_i32_0 : i32
    scf.if %2 {
      %cst_16 = arith.constant 0.000000e+00 : f32
      %18 = vector.broadcast %cst_16 : f32 to vector<1x32xf32>
      %c0_17 = arith.constant 0 : index
      %c0_18 = arith.constant 0 : index
      %19 = vector.load %arg4[%c0_17, %c0_18] : memref<1x32xf32, #tpu.memory_space<vmem>>, vector<1x32xf32>
      tpu.vector_store %arg4[%c0_17, %c0_18], %18 {strides = array<i32>} : memref<1x32xf32, #tpu.memory_space<vmem>>, vector<1x32xf32>,
      %cst_19 = arith.constant 0.000000e+00 : f32
      %20 = vector.broadcast %cst_19 : f32 to vector<1x32xf32>
      %c0_20 = arith.constant 0 : index
      %c0_21 = arith.constant 0 : index
      %21 = vector.load %arg5[%c0_20, %c0_21] : memref<1x32xf32, #tpu.memory_space<vmem>>, vector<1x32xf32>
      tpu.vector_store %arg5[%c0_20, %c0_21], %20 {strides = array<i32>} : memref<1x32xf32, #tpu.memory_space<vmem>>, vector<1x32xf32>,
    } else {
    }
    %c0 = arith.constant 0 : index
    %c0_1 = arith.constant 0 : index
    %3 = vector.load %arg1[%c0, %c0_1] : memref<128x4xf32, #tpu.memory_space<vmem>>, vector<128x4xf32>
    %c0_2 = arith.constant 0 : index
    %c0_3 = arith.constant 0 : index
    %4 = vector.load %arg2[%c0_2, %c0_3] : memref<4x32xf32, #tpu.memory_space<vmem>>, vector<4x32xf32>
    %cst = arith.constant dense<0.000000e+00> : vector<128x32xf32>
    %5 = tpu.matmul %3, %4, %cst {dimension_numbers = #tpu.dot_dimension_numbers<[1], [0], [0], [1], [0, 0, 1, 1], [], []>} : vector<128x4xf32>, vector<4x32xf32>, vector<128x32xf32> -> vector<128x32xf32>
    %c0_4 = arith.constant 0 : index
    %c0_5 = arith.constant 0 : index
    %6 = vector.load %arg3[%c0_4, %c0_5] : memref<128x32xf32, #tpu.memory_space<vmem>>, vector<128x32xf32>
    tpu.vector_store %arg3[%c0_4, %c0_5], %5 {strides = array<i32>} : memref<128x32xf32, #tpu.memory_space<vmem>>, vector<128x32xf32>,
    %c0_6 = arith.constant 0 : index
    %c0_7 = arith.constant 0 : index
    %7 = vector.load %arg4[%c0_6, %c0_7] : memref<1x32xf32, #tpu.memory_space<vmem>>, vector<1x32xf32>
    %cst_8 = arith.constant dense<0.000000e+00> : vector<32xf32>
    %8 = vector.multi_reduction <add>, %5, %cst_8 [0] : vector<128x32xf32> to vector<32xf32>
    %9 = vector.shape_cast %8 : vector<32xf32> to vector<1x32xf32>
    %10 = arith.addf %7, %9 : vector<1x32xf32>
    %c0_9 = arith.constant 0 : index
    %c0_10 = arith.constant 0 : index
    %11 = vector.load %arg4[%c0_9, %c0_10] : memref<1x32xf32, #tpu.memory_space<vmem>>, vector<1x32xf32>
    tpu.vector_store %arg4[%c0_9, %c0_10], %10 {strides = array<i32>} : memref<1x32xf32, #tpu.memory_space<vmem>>, vector<1x32xf32>,
    %c0_11 = arith.constant 0 : index
    %c0_12 = arith.constant 0 : index
    %12 = vector.load %arg5[%c0_11, %c0_12] : memref<1x32xf32, #tpu.memory_space<vmem>>, vector<1x32xf32>
    %13 = arith.mulf %5, %5 : vector<128x32xf32>
    %cst_13 = arith.constant dense<0.000000e+00> : vector<32xf32>
    %14 = vector.multi_reduction <add>, %13, %cst_13 [0] : vector<128x32xf32> to vector<32xf32>
    %15 = vector.shape_cast %14 : vector<32xf32> to vector<1x32xf32>
    %16 = arith.addf %12, %15 : vector<1x32xf32>
    %c0_14 = arith.constant 0 : index
    %c0_15 = arith.constant 0 : index
    %17 = vector.load %arg5[%c0_14, %c0_15] : memref<1x32xf32, #tpu.memory_space<vmem>>, vector<1x32xf32>
    tpu.vector_store %arg5[%c0_14, %c0_15], %16 {strides = array<i32>} : memref<1x32xf32, #tpu.memory_space<vmem>>, vector<1x32xf32>,
    return
  }
  func.func @transform_0(%arg0: i32) -> (i32, i32) {
    %c0_i32 = arith.constant 0 : i32
    %c0_i32_0 = arith.constant 0 : i32
    return %arg0, %c0_i32 : i32, i32
  }
  func.func @transform_1(%arg0: i32) -> (i32, i32) {
    %c0_i32 = arith.constant 0 : i32
    %c0_i32_0 = arith.constant 0 : i32
    %c0_i32_1 = arith.constant 0 : i32
    return %c0_i32, %c0_i32_0 : i32, i32
  }
  func.func @transform_2(%arg0: i32) -> (i32, i32) {
    %c0_i32 = arith.constant 0 : i32
    %c0_i32_0 = arith.constant 0 : i32
    return %arg0, %c0_i32 : i32, i32
  }
  func.func @transform_3(%arg0: i32) -> (i32, i32) {
    %c0_i32 = arith.constant 0 : i32
    %c0_i32_0 = arith.constant 0 : i32
    %c0_i32_1 = arith.constant 0 : i32
    return %c0_i32, %c0_i32_0 : i32, i32
  }
  func.func @transform_4(%arg0: i32) -> (i32, i32) {
    %c0_i32 = arith.constant 0 : i32
    %c0_i32_0 = arith.constant 0 : i32
    %c0_i32_1 = arith.constant 0 : i32
    return %c0_i32, %c0_i32_0 : i32, i32
  }
}

</mosaic_0001>

<bundles_post_ra>
// kernel: tpu_custom_call.1
= control target key start
LH: loop header
LB: loop body
LE: loop exit
PB: predicated region body
PF: predicated region fallthrough
CT: control target
= control target key end

     0   :  { %10 = vsyncpa [#allocation3], 0  ;;  %vm89_vm0 = vcmask 1043456   ;;  %vm40_vm1 = vcmask 31744   ;;  %s614_s0 = inlined_call_operand.vmem [shape: f32[128,4], index: 0, kind: input, shape index: {}]   ;;  %s615_s1 = inlined_call_operand.vmem [shape: f32[4,32], index: 1, kind: input, shape index: {}]   ;;  %s616_s2 = inlined_call_operand.vmem [shape: f32[128,32], index: 2, kind: output, shape index: {0}]   ;;  %s617_s3 = inlined_call_operand.hbm [shape: f32[1,32], index: 3, kind: output, shape index: {1}]   ;;  %s618_s4 = inlined_call_operand.hbm [shape: f32[1,32], index: 4, kind: output, shape index: {2}]  }
   0x1   :  { %v39_v0 = vld [vmem:[%s615_s1] sm:$0xf] }
   0x2   :  { %v23_v1 = vld [vmem:[%s614_s0] sm:$0xff]  ;;  %308 = vmatpush.msk.msra.mxu0 %vm89_vm0, %v39_v0  ;;  %325 = vmatpush.msk.msra.mxu1 %vm89_vm0, %v39_v0 }
   0x3   :  { %v27_v2 = vld [vmem:[%s614_s0 + $0x20] sm:$0xff]  ;;  %309 = vmatmul.msk.f32.vlgmr.msra.gmra.mxu0 %vm40_vm1, %v23_v1  ;;  %326 = vmatpush.msk.msra.mxu2 %vm89_vm0, %v39_v0 }
   0x4   :  { %v31_v3 = vld [vmem:[%s614_s0 + $0x40] sm:$0xff]  ;;  %313 = vmatmul.msk.f32.vlgmr.msra.gmra.mxu1 %vm40_vm1, %v27_v2  ;;  %327 = vmatpush.msk.msra.mxu3 %vm89_vm0, %v39_v0 }
   0x5   :  { %v35_v4 = vld [vmem:[%s614_s0 + $0x60] sm:$0xff]  ;;  %317 = vmatmul.msk.f32.vlgmr.msra.gmra.mxu2 %vm40_vm1, %v31_v3 }
   0x6   :  { %321 = vmatmul.msk.f32.vlgmr.msra.gmra.mxu3 %vm40_vm1, %v35_v4 }
   0x7   :  { %11 = vsyncpa [#allocation5], 0  ;;  %v24_v5 = vld [vmem:[%s614_s0 + $0x8] sm:$0xff]  ;;  %v25_v9 = vld [vmem:[%s614_s0 + $0x10] sm:$0xff]  ;;  %vm158_vm2 = vcmask 261120   ;;  %vm20_vm3 = vcmask 253952  }
   0x8   :  { %v28_v6 = vld [vmem:[%s614_s0 + $0x28] sm:$0xff]  ;;  %v29_v10 = vld [vmem:[%s614_s0 + $0x30] sm:$0xff]  ;;  %v26_v13 = vld [vmem:[%s614_s0 + $0x18] sm:$0xff]  ;;  %v383_v41 = vmov 0.0   ;;  %s281_s27 = sshll.u32 %s617_s3, 4  ;;  %s385_s28 = smov [#allocation4]   ;;  %s282_s27 = int_to_ptr.hbm [resolvable:$true] %s281_s27 }
   0x9   :  { %v32_v7 = vld [vmem:[%s614_s0 + $0x48] sm:$0xff]  ;;  %v33_v11 = vld [vmem:[%s614_s0 + $0x50] sm:$0xff]  ;;  %v30_v14 = vld [vmem:[%s614_s0 + $0x38] sm:$0xff]  ;;  %21 = vst.msk [vmem:[#allocation2] sm:$0x1] %vm20_vm3, %v383_v41  ;;  %s290_s29 = sshll.u32 %s385_s28, 4  ;;  %s291_s29 = int_to_ptr.vmem [resolvable:$true] %s290_s29 }
   0xa   :  { %v36_v8 = vld [vmem:[%s614_s0 + $0x68] sm:$0xff]  ;;  %v37_v12 = vld [vmem:[%s614_s0 + $0x70] sm:$0xff]  ;;  %v34_v15 = vld [vmem:[%s614_s0 + $0x58] sm:$0xff]  ;;  %22 = vst.msk [vmem:[#allocation4] sm:$0x1] %vm20_vm3, %v383_v41  ;;  %s292_s6 = sshll.u32 %s618_s4, 4  ;;  %s293_s6 = int_to_ptr.hbm [resolvable:$true] %s292_s6 }
   0xb   :  { %310 = vmatmul.msk.f32.gmra.mxu0 %vm40_vm1, %v24_v5  ;;  %v38_v16 = vld [vmem:[%s614_s0 + $0x78] sm:$0xff] }
   0xc   :  { %314 = vmatmul.msk.f32.gmra.mxu1 %vm40_vm1, %v28_v6 }
   0xd   :  { %318 = vmatmul.msk.f32.gmra.mxu2 %vm40_vm1, %v32_v7 }
   0xe   :  { %322 = vmatmul.msk.f32.gmra.mxu3 %vm40_vm1, %v36_v8 }
  0x13   :  { %311 = vmatmul.msk.f32.gmra.mxu0 %vm40_vm1, %v25_v9 }
  0x14   :  { %315 = vmatmul.msk.f32.gmra.mxu1 %vm40_vm1, %v29_v10 }
  0x15   :  { %319 = vmatmul.msk.f32.gmra.mxu2 %vm40_vm1, %v33_v11 }
  0x16   :  { %323 = vmatmul.msk.f32.gmra.mxu3 %vm40_vm1, %v37_v12 }
  0x1b   :  { %312 = vmatmul.msk.f32.gmra.mxu0 %vm40_vm1, %v26_v13 }
  0x1c   :  { %316 = vmatmul.msk.f32.gmra.mxu1 %vm40_vm1, %v30_v14 }
  0x1d   :  { %320 = vmatmul.msk.f32.gmra.mxu2 %vm40_vm1, %v34_v15 }
  0x1e   :  { %324 = vmatmul.msk.f32.gmra.mxu3 %vm40_vm1, %v38_v16 }
  0x80   :  { %v110_v17 = vpop.f32.mrf.mxu0 }
  0x81   :  { %v122_v18 = vpop.f32.mrf.mxu1  ;;  %159 = vst.msk [vmem:[%s616_s2] sm:$0xff] %vm158_vm2, %v110_v17  ;;  %v217_v28 = vmul.f32 %v110_v17, %v110_v17  ;;  %v176_v31 = vsel %vm158_vm2, %v110_v17, 0.0 }
  0x82   :  { %163 = vst.msk [vmem:[%s616_s2 + $0x20] sm:$0xff] %vm158_vm2, %v122_v18  ;;  %v221_v42 = vmul.f32 %v122_v18, %v122_v18  ;;  %v183_v49 = vsel %vm158_vm2, %v122_v18, 0.0 }
  0x83   :  { %v233_v35 = vsel %vm158_vm2, %v217_v28, 0.0 }
  0x84   :  { %v240_v54 = vsel %vm158_vm2, %v221_v42, 0.0 }
  0x88   :  { %v113_v19 = vpop.f32.mrf.mxu0  ;;  %v490_v21 = vpop.f32.mrf.mxu2 }
  0x89   :  { %v125_v20 = vpop.f32.mrf.mxu1  ;;  %160 = vst.msk [vmem:[%s616_s2 + $0x8] sm:$0xff] %vm158_vm2, %v113_v19  ;;  %v492_v22 = vpop.f32.mrf.mxu3  ;;  %v218_v25 = vmul.f32 %v113_v19, %v113_v19  ;;  %v177_v29 = vsel %vm158_vm2, %v113_v19, 0.0  ;;  %v225_v1 = vmul.f32 %v490_v21, %v490_v21  ;;  %v191_v8 = vsel %vm158_vm2, %v490_v21, 0.0 }
  0x8a   :  { %164 = vst.msk [vmem:[%s616_s2 + $0x28] sm:$0xff] %vm158_vm2, %v125_v20  ;;  %v178_v34 = vadd.f32 %v177_v29, %v176_v31  ;;  %v222_v50 = vmul.f32 %v125_v20, %v125_v20  ;;  %v185_v55 = vsel %vm158_vm2, %v125_v20, 0.0 }
  0x8b   :  { %167 = vst.msk [vmem:[%s616_s2 + $0x40] sm:$0xff] %vm158_vm2, %v490_v21  ;;  %v234_v32 = vsel %vm158_vm2, %v218_v25, 0.0  ;;  %v248_v12 = vsel %vm158_vm2, %v225_v1, 0.0 }
  0x8c   :  { %171 = vst.msk [vmem:[%s616_s2 + $0x60] sm:$0xff] %vm158_vm2, %v492_v22  ;;  %v235_v37 = vadd.f32 %v234_v32, %v233_v35  ;;  %v242_v60 = vsel %vm158_vm2, %v222_v50, 0.0 }
  0x90   :  { %v116_v23 = vpop.f32.mrf.mxu0  ;;  %v512_v26 = vpop.f32.mrf.mxu2 }
  0x91   :  { %v128_v24 = vpop.f32.mrf.mxu1  ;;  %161 = vst.msk [vmem:[%s616_s2 + $0x10] sm:$0xff] %vm158_vm2, %v116_v23  ;;  %v514_v27 = vpop.f32.mrf.mxu3  ;;  %v219_v30 = vmul.f32 %v116_v23, %v116_v23  ;;  %v179_v33 = vsel %vm158_vm2, %v116_v23, 0.0  ;;  %v226_v9 = vmul.f32 %v512_v26, %v512_v26  ;;  %v193_v13 = vsel %vm158_vm2, %v512_v26, 0.0 }
  0x92   :  { %165 = vst.msk [vmem:[%s616_s2 + $0x30] sm:$0xff] %vm158_vm2, %v128_v24  ;;  %v180_v38 = vadd.f32 %v179_v33, %v178_v34  ;;  %v223_v56 = vmul.f32 %v128_v24, %v128_v24  ;;  %v187_v61 = vsel %vm158_vm2, %v128_v24, 0.0  ;;  %v229_v24 = vmul.f32 %v492_v22, %v492_v22 }
  0x93   :  { %168 = vst.msk [vmem:[%s616_s2 + $0x48] sm:$0xff] %vm158_vm2, %v512_v26  ;;  %v236_v36 = vsel %vm158_vm2, %v219_v30, 0.0  ;;  %v250_v18 = vsel %vm158_vm2, %v226_v9, 0.0  ;;  %v199_v30 = vsel %vm158_vm2, %v492_v22, 0.0  ;;  %v230_v31 = vmul.f32 %v514_v27, %v514_v27 }
  0x94   :  { %172 = vst.msk [vmem:[%s616_s2 + $0x68] sm:$0xff] %vm158_vm2, %v514_v27  ;;  %v237_v47 = vadd.f32 %v236_v36, %v235_v37  ;;  %v244_v2 = vsel %vm158_vm2, %v223_v56, 0.0  ;;  %v256_v34 = vsel %vm158_vm2, %v229_v24, 0.0  ;;  %v201_v35 = vsel %vm158_vm2, %v514_v27, 0.0 }
  0x98   :  { %v119_v39 = vpop.f32.mrf.mxu0  ;;  %v140_v45 = vpop.f32.mrf.mxu2 }
  0x99   :  { %v131_v40 = vpop.f32.mrf.mxu1  ;;  %162 = vst.msk [vmem:[%s616_s2 + $0x18] sm:$0xff] %vm158_vm2, %v119_v39  ;;  %v181_v43 = vsel %vm158_vm2, %v119_v39, 0.0  ;;  %v220_v44 = vmul.f32 %v119_v39, %v119_v39  ;;  %v542_v46 = vpop.f32.mrf.mxu3  ;;  %v227_v14 = vmul.f32 %v140_v45, %v140_v45  ;;  %v195_v19 = vsel %vm158_vm2, %v140_v45, 0.0 }
  0x9a   :  { %v182_v48 = vadd.f32 %v181_v43, %v180_v38  ;;  %166 = vst.msk [vmem:[%s616_s2 + $0x38] sm:$0xff] %vm158_vm2, %v131_v40  ;;  %v224_v57 = vmul.f32 %v131_v40, %v131_v40  ;;  %v189_v62 = vsel %vm158_vm2, %v131_v40, 0.0  ;;  %v231_v36 = vmul.f32 %v542_v46, %v542_v46 }
  0x9b   :  { %v238_v51 = vsel %vm158_vm2, %v220_v44, 0.0  ;;  %169 = vst.msk [vmem:[%s616_s2 + $0x50] sm:$0xff] %vm158_vm2, %v140_v45  ;;  %v252_v25 = vsel %vm158_vm2, %v227_v14, 0.0  ;;  %v258_v40 = vsel %vm158_vm2, %v230_v31, 0.0  ;;  %v203_v22 = vsel %vm158_vm2, %v542_v46, 0.0 }
  0x9c   :  { %v184_v52 = vadd.f32 %v183_v49, %v182_v48  ;;  %v239_v53 = vadd.f32 %v238_v51, %v237_v47  ;;  %173 = vst.msk [vmem:[%s616_s2 + $0x70] sm:$0xff] %vm158_vm2, %v542_v46  ;;  %v246_v3 = vsel %vm158_vm2, %v224_v57, 0.0  ;;  %v260_v44 = vsel %vm158_vm2, %v231_v36, 0.0  ;;  %v175_v57 = vld [vmem:[#allocation2] sm:$0x1] }
  0x9e   :  { %v241_v58 = vadd.f32 %v240_v54, %v239_v53  ;;  %v186_v59 = vadd.f32 %v185_v55, %v184_v52 }
  0xa0   :  { %v188_v63 = vadd.f32 %v187_v61, %v186_v59  ;;  %v243_v0 = vadd.f32 %v242_v60, %v241_v58  ;;  %v143_v4 = vpop.f32.mrf.mxu2  ;;  %v216_v60 = vld [vmem:[#allocation4] sm:$0x1] }
  0xa1   :  { %v155_v5 = vpop.f32.mrf.mxu3  ;;  %170 = vst.msk [vmem:[%s616_s2 + $0x58] sm:$0xff] %vm158_vm2, %v143_v4  ;;  %v228_v15 = vmul.f32 %v143_v4, %v143_v4  ;;  %v197_v20 = vsel %vm158_vm2, %v143_v4, 0.0 }
  0xa2   :  { %v245_v6 = vadd.f32 %v244_v2, %v243_v0  ;;  %v190_v7 = vadd.f32 %v189_v62, %v188_v63  ;;  %174 = vst.msk [vmem:[%s616_s2 + $0x78] sm:$0xff] %vm158_vm2, %v155_v5  ;;  %v232_v37 = vmul.f32 %v155_v5, %v155_v5  ;;  %v205_v41 = vsel %vm158_vm2, %v155_v5, 0.0  ;;  %s384_s2 = smov [#allocation2]  }
  0xa3   :  { %v254_v28 = vsel %vm158_vm2, %v228_v15, 0.0  ;;  %s279_s0 = sshll.u32 %s384_s2, 4  ;;  %s280_s0 = int_to_ptr.vmem [resolvable:$true] %s279_s0 }
  0xa4   :  { %v192_v10 = vadd.f32 %v191_v8, %v190_v7  ;;  %v247_v11 = vadd.f32 %v246_v3, %v245_v6  ;;  %v262_v45 = vsel %vm158_vm2, %v232_v37, 0.0 }
  0xa6   :  { %v249_v16 = vadd.f32 %v248_v12, %v247_v11  ;;  %v194_v17 = vadd.f32 %v193_v13, %v192_v10 }
  0xa8   :  { %v196_v21 = vadd.f32 %v195_v19, %v194_v17  ;;  %v251_v23 = vadd.f32 %v250_v18, %v249_v16 }
  0xaa   :  { %v253_v26 = vadd.f32 %v252_v25, %v251_v23  ;;  %v198_v29 = vadd.f32 %v197_v20, %v196_v21 }
  0xac   :  { %v200_v32 = vadd.f32 %v199_v30, %v198_v29  ;;  %v255_v33 = vadd.f32 %v254_v28, %v253_v26 }
  0xae   :  { %v257_v38 = vadd.f32 %v256_v34, %v255_v33  ;;  %v202_v39 = vadd.f32 %v201_v35, %v200_v32 }
  0xb0   :  { %v204_v42 = vadd.f32 %v203_v22, %v202_v39  ;;  %v259_v43 = vadd.f32 %v258_v40, %v257_v38 }
  0xb2   :  { %v261_v27 = vadd.f32 %v260_v44, %v259_v43  ;;  %v206_v47 = vadd.f32 %v205_v41, %v204_v42 }
  0xb4   :  { %v207_v48 = vrot.slane %v206_v47, 4  ;;  %v263_v49 = vadd.f32 %v262_v45, %v261_v27 }
  0xb6   :  { %v208_v50 = vadd.f32 %v207_v48, %v206_v47  ;;  %v264_v51 = vrot.slane %v263_v49, 4 }
  0xb8   :  { %v209_v52 = vrot.slane %v208_v50, 2  ;;  %v265_v53 = vadd.f32 %v264_v51, %v263_v49 }
  0xba   :  { %v210_v54 = vadd.f32 %v209_v52, %v208_v50  ;;  %v266_v55 = vrot.slane %v265_v53, 2 }
  0xbc   :  { %v211_v56 = vrot.slane %v210_v54, 1  ;;  %v267_v46 = vadd.f32 %v266_v55, %v265_v53 }
  0xbe   :  { %v268_v58 = vrot.slane %v267_v46, 1  ;;  %v212_v59 = vadd.f32 %v211_v56, %v210_v54 }
  0xc0   :  { %v213_v61 = vadd.f32 %v212_v59, %v175_v57  ;;  %v269_v62 = vadd.f32 %v268_v58, %v267_v46 }
  0xc2   :  { %215 = vst.msk [vmem:[#allocation2] sm:$0x1] %vm20_vm3, %v213_v61  ;;  %v270_v63 = vadd.f32 %v269_v62, %v216_v60 }
  0xc3   :  { %284 = dma.vmem_to_hbm [thread:$0]  %s280_s0, 16, %s282_s27, [#allocation3]  }
  0xc4   :  { %271 = vst.msk [vmem:[#allocation4] sm:$0x1] %vm20_vm3, %v270_v63 }
  0xc5   :  { %295 = dma.vmem_to_hbm [thread:$0]  %s291_s29, 16, %s293_s6, [#allocation5]  }
  0xc6   :  { %379 = dma.done.wait [#allocation3], 16  }
  0xc7   :  { %380 = vsyncadd [#allocation3], 4294967280 }
  0xc8   :  { %381 = dma.done.wait [#allocation5], 16  }
  0xc9   :  { %382 = vsyncadd [#allocation5], 4294967280 }
  0xca   :  { %306 = vsyncpa [#allocation3], 1 }
  0xcb   :  { %307 = vsyncpa [#allocation5], 1 }

</bundles_post_ra>
